<compile_context>
chip_gen: v7x
topology: tpu7x:2x2x1
jax: 0.10.0
libtpu: 0.0.40
codegen_flags: <defaults>
</compile_context>

<pallas_src>
import math

import jax
import jax.numpy as jnp
from jax import lax
from jax.experimental import pallas as pl
from jax.experimental.pallas import tpu as pltpu


# ----------------------------------------------------------------------------
# Pallas kernel
# ----------------------------------------------------------------------------
def _arranger_kernel(xt_ref, wr_ref, bd_ref, o_ref):
    # xt_ref: (H, Bg*W)        -- batch folded into the lane axis
    # wr_ref: (R, H)           -- row rearrange matrix
    # bd_ref: (Bg*W, Bg*C)     -- kron(I_Bg, weight_column), block-diagonal
    # o_ref : (R, Bg*C)
    #
    # NOTE: HIGHEST precision is kept so the numerics match the f32 reference
    # exactly; at larger sizes DEFAULT (bf16 MXU passes, f32 accumulation)
    # would be ~3-6x cheaper on the MXU if the tolerance allows.
    z = jnp.dot(wr_ref[...], xt_ref[...],
                preferred_element_type=jnp.float32,
                precision=lax.Precision.HIGHEST)
    o_ref[...] = jnp.dot(z, bd_ref[...],
                         preferred_element_type=jnp.float32,
                         precision=lax.Precision.HIGHEST).astype(o_ref.dtype)


def _num_groups(batch, width, cols):
    """Largest parallel split of the batch keeping each lane slab % 128 == 0."""
    best = 1
    for g in range(2, batch + 1):
        bg = batch // g
        if batch % g == 0 and (bg * width) % 128 == 0 and (bg * cols) % 128 == 0:
            best = g
    return best


# ----------------------------------------------------------------------------
# Wrapper (forward pass of Arranger / RE_neural_network)
# ----------------------------------------------------------------------------
def arranger_forward(x, weight_row, weight_column):
    """out = weight_row @ x @ weight_column, broadcast over leading dims."""
    H, W = x.shape[-2], x.shape[-1]
    R, H2 = weight_row.shape
    W2, C = weight_column.shape
    assert H2 == H and W2 == W

    lead = x.shape[:-2]
    B = math.prod(lead) if lead else 1

    # ---- wrapper-side layout plumbing (tiny XLA ops, not kernel compute) ----
    # (B, H, W) -> (H, B*W): batch goes into the lane axis so the kernel sees
    # one dense 2-D slab instead of B tiny matrices.
    xt = jnp.transpose(x.reshape(B, H, W).astype(jnp.float32), (1, 0, 2))
    xt = xt.reshape(H, B * W)

    G = _num_groups(B, W, C)          # parallel batch groups (1 at test size)
    Bg = B // G
    # Block-diagonal right-multiply operand; identical for every batch group,
    # so a single (Bg*W, Bg*C) array is shared across the whole grid.
    bd = jnp.kron(jnp.eye(Bg, dtype=jnp.float32),
                  weight_column.astype(jnp.float32))

    out = pl.pallas_call(
        _arranger_kernel,
        out_shape=jax.ShapeDtypeStruct((R, B * C), jnp.float32),
        grid=(G,),
        in_specs=[
            pl.BlockSpec((H, Bg * W), lambda g: (0, g)),       # activation slab
            pl.BlockSpec((R, H), lambda g: (0, 0)),            # weight_row
            pl.BlockSpec((Bg * W, Bg * C), lambda g: (0, 0)),  # block-diag col
        ],
        out_specs=pl.BlockSpec((R, Bg * C), lambda g: (0, g)),
        compiler_params=pltpu.CompilerParams(
            dimension_semantics=("parallel",)),
    )(xt, weight_row.astype(jnp.float32), bd)

    # (R, B*C) -> (..., R, C)
    out = out.reshape(R, B, C).transpose(1, 0, 2)
    return out.reshape(*lead, R, C) if lead else out.reshape(R, C)


# ----------------------------------------------------------------------------
# Pure-JAX reference (for correctness check)
# ----------------------------------------------------------------------------
def ref_forward(x, weight_row, weight_column):
    mm = lambda a, b: jnp.matmul(a, b, precision=lax.Precision.HIGHEST)
    return mm(weight_row, mm(x, weight_column))


# ----------------------------------------------------------------------------
if __name__ == "__main__":
    key = jax.random.PRNGKey(0)
    k_x, k_row, k_col = jax.random.split(key, 3)

    matrix_row = 16
    matrix_column = 16
    batch = 2
    channels = 4

    # RE_neural_network.reset_parameters() draws the rearrange weights from
    # uniform(0, 1); use that so the forward is non-trivial (eye() init would
    # make the output equal the input).
    weight_row = jax.random.uniform(
        k_row, (matrix_row, matrix_row), jnp.float32)
    weight_column = jax.random.uniform(
        k_col, (matrix_column, matrix_column), jnp.float32)
    x = jax.random.normal(
        k_x, (batch, channels, matrix_row, matrix_column), jnp.float32)

    out = jax.block_until_ready(arranger_forward(x, weight_row, weight_column))
    assert out.shape == (batch, channels, matrix_row, matrix_column), out.shape

    ref = jax.block_until_ready(ref_forward(x, weight_row, weight_column))
    max_err = float(jnp.max(jnp.abs(out - ref)))
    assert max_err < 5e-4, f"mismatch vs reference: {max_err}"

    print("KERNEL_OK")
</pallas_src>

<mosaic_0001>
module attributes {stable_mosaic.version = 11 : i64} {
  func.func @_arranger_kernel(%arg0: i32, %arg1: memref<16x128xf32, #tpu.memory_space<vmem>>, %arg2: memref<16x16xf32, #tpu.memory_space<vmem>>, %arg3: memref<128x128xf32, #tpu.memory_space<vmem>>, %arg4: memref<16x128xf32, #tpu.memory_space<vmem>>) attributes {dimension_semantics = [#tpu.dimension_semantics<parallel>], iteration_bounds = array<i64: 1>, scalar_prefetch = 0 : i64, scratch_operands = 0 : i64, tpu.core_type = #tpu.core_type<tc>, window_params = [{transform_indices = @transform_0, window_bounds = array<i64: 16, 128>}, {pipeline_mode = #tpu.pipeline_mode<synchronous>, transform_indices = @transform_1, window_bounds = array<i64: 16, 16>}, {pipeline_mode = #tpu.pipeline_mode<synchronous>, transform_indices = @transform_2, window_bounds = array<i64: 128, 128>}, {transform_indices = @transform_3, window_bounds = array<i64: 16, 128>}]} {
    %c0 = arith.constant 0 : index
    %c0_0 = arith.constant 0 : index
    %0 = vector.load %arg2[%c0, %c0_0] : memref<16x16xf32, #tpu.memory_space<vmem>>, vector<16x16xf32>
    %c0_1 = arith.constant 0 : index
    %c0_2 = arith.constant 0 : index
    %1 = vector.load %arg1[%c0_1, %c0_2] : memref<16x128xf32, #tpu.memory_space<vmem>>, vector<16x128xf32>
    %cst = arith.constant dense<0.000000e+00> : vector<16x128xf32>
    %2 = tpu.matmul %0, %1, %cst {dimension_numbers = #tpu.dot_dimension_numbers<[1], [0], [0], [1], [0, 0, 1, 1], [], []>, precision = #tpu.contract_precision<fp32>} : vector<16x16xf32>, vector<16x128xf32>, vector<16x128xf32> -> vector<16x128xf32>
    %c0_3 = arith.constant 0 : index
    %c0_4 = arith.constant 0 : index
    %3 = vector.load %arg3[%c0_3, %c0_4] : memref<128x128xf32, #tpu.memory_space<vmem>>, vector<128x128xf32>
    %cst_5 = arith.constant dense<0.000000e+00> : vector<16x128xf32>
    %4 = tpu.matmul %2, %3, %cst_5 {dimension_numbers = #tpu.dot_dimension_numbers<[1], [0], [0], [1], [0, 0, 1, 1], [], []>, precision = #tpu.contract_precision<fp32>} : vector<16x128xf32>, vector<128x128xf32>, vector<16x128xf32> -> vector<16x128xf32>
    %c0_6 = arith.constant 0 : index
    %c0_7 = arith.constant 0 : index
    %5 = vector.load %arg4[%c0_6, %c0_7] : memref<16x128xf32, #tpu.memory_space<vmem>>, vector<16x128xf32>
    tpu.vector_store %arg4[%c0_6, %c0_7], %4 {strides = array<i32>} : memref<16x128xf32, #tpu.memory_space<vmem>>, vector<16x128xf32>,
    return
  }
  func.func @transform_0(%arg0: i32) -> (i32, i32) {
    %c0_i32 = arith.constant 0 : i32
    %c0_i32_0 = arith.constant 0 : i32
    return %c0_i32, %arg0 : i32, i32
  }
  func.func @transform_1(%arg0: i32) -> (i32, i32) {
    %c0_i32 = arith.constant 0 : i32
    %c0_i32_0 = arith.constant 0 : i32
    %c0_i32_1 = arith.constant 0 : i32
    return %c0_i32, %c0_i32_0 : i32, i32
  }
  func.func @transform_2(%arg0: i32) -> (i32, i32) {
    %c0_i32 = arith.constant 0 : i32
    %c0_i32_0 = arith.constant 0 : i32
    %c0_i32_1 = arith.constant 0 : i32
    return %c0_i32, %c0_i32_0 : i32, i32
  }
  func.func @transform_3(%arg0: i32) -> (i32, i32) {
    %c0_i32 = arith.constant 0 : i32
    %c0_i32_0 = arith.constant 0 : i32
    return %c0_i32, %arg0 : i32, i32
  }
}

</mosaic_0001>

<bundles_post_ra>
// kernel: tpu_custom_call.1
= control target key start
LH: loop header
LB: loop body
LE: loop exit
PB: predicated region body
PF: predicated region fallthrough
CT: control target
= control target key end

     0   :  { %8 = vsyncpa [#allocation3], 0  ;;  %s2356_s0 = inlined_call_operand.hbm [shape: f32[16,128], index: 0, kind: input, shape index: {}]   ;;  %s2357_s1 = inlined_call_operand.hbm [shape: f32[16,16], index: 1, kind: input, shape index: {}]   ;;  %s2358_s2 = inlined_call_operand.hbm [shape: f32[128,128], index: 2, kind: input, shape index: {}]   ;;  %s2359_s3 = inlined_call_operand.hbm [shape: f32[16,128], index: 3, kind: output, shape index: {}]  }
   0x1   :  { %9 = vsyncpa [#allocation6], 0 }
   0x2   :  { %10 = vsyncpa [#allocation4], 0  ;;  %s2009_s12 = smov [#allocation5]   ;;  %s2010_s14 = smov [#allocation2]  }
   0x3   :  { %s28_s13 = sshll.u32 %s2009_s12, 4  ;;  %s16_s15 = sshll.u32 %s2010_s14, 4  ;;  %s29_s13 = int_to_ptr.vmem [resolvable:$true] %s28_s13  ;;  %s2035_s15 = int_to_ptr.vmem [resolvable:$true] %s16_s15 }
   0x4   :  { %s1915_s18 = scalar_lea.hbm %s2357_s1, 256 }
   0x5   :  { %p1916_p0 = scmp.ne.s32.totalorder %s2357_s1, %s1915_s18  ;;  %p1919_p1 = scmp.lt.u32.totalorder %s1915_s18, %s2357_s1 }
   0x7   :  { %p1921_p2 = pnand %p1919_p1, %p1916_p0 }
   0x9   :  { %1924 = shalt.err (!%p1921_p2)
}
   0xa   :  { %s1925_s23 = scalar_lea.vmem %s29_s13, 256  ;;  %p1930_p4 = scmp.lt.s32.totalorder %s29_s13, %s29_s13 }
   0xb   :  { %p1926_p3 = scmp.ne.s32.totalorder %s29_s13, %s1925_s23  ;;  %p1931_p5 = scmp.lt.s32.totalorder %s1925_s23, %s1925_s23 }
   0xd   :  { %p1932_p6 = por %p1931_p5, %p1930_p4 }
   0xf   :  { %p1933_p7 = pnand %p1932_p6, %p1926_p3 }
  0x11   :  { %1936 = shalt.err (!%p1933_p7)
}
  0x12   :  { %s2011_s24 = smov 128   ;;  %s2012_s25 = smov 8  }
  0x13   :  { %34 = dma.hbm_to_vmem [thread:$0]  %s2357_s1, 256, %s29_s13, [#allocation6], %s2011_s24, %s2011_s24, %s2012_s25  }
  0x14   :  { %s1937_s30 = scalar_lea.hbm %s2356_s0, 256 }
  0x15   :  { %p1938_p8 = scmp.ne.s32.totalorder %s2356_s0, %s1937_s30  ;;  %p1941_p9 = scmp.lt.u32.totalorder %s1937_s30, %s2356_s0 }
  0x17   :  { %p1943_p10 = pnand %p1941_p9, %p1938_p8 }
  0x19   :  { %1946 = shalt.err (!%p1943_p10)
}
  0x1a   :  { %s1947_s8 = scalar_lea.vmem %s2035_s15, 256  ;;  %p1952_p12 = scmp.lt.s32.totalorder %s2035_s15, %s2035_s15 }
  0x1b   :  { %p1948_p11 = scmp.ne.s32.totalorder %s2035_s15, %s1947_s8  ;;  %p1953_p13 = scmp.lt.s32.totalorder %s1947_s8, %s1947_s8 }
  0x1d   :  { %p1954_p0 = por %p1953_p13, %p1952_p12 }
  0x1f   :  { %p1955_p1 = pnand %p1954_p0, %p1948_p11 }
  0x21   :  { %1958 = shalt.err (!%p1955_p1)
}
  0x22   :  { %22 = dma.hbm_to_vmem [thread:$0]  %s2356_s0, 256, %s2035_s15, [#allocation3], %s2011_s24, %s2011_s24, %s2012_s25  }
  0x23   :  { %s2013_s10 = smov [#allocation7]   ;;  %s1959_s14 = scalar_lea.hbm %s2358_s2, 2048 }
  0x24   :  { %s40_s11 = sshll.u32 %s2013_s10, 4  ;;  %p1960_p2 = scmp.ne.s32.totalorder %s2358_s2, %s1959_s14  ;;  %s41_s11 = int_to_ptr.vmem [resolvable:$true] %s40_s11 }
  0x25   :  { %p1963_p3 = scmp.lt.u32.totalorder %s1959_s14, %s2358_s2 }
  0x27   :  { %p1965_p4 = pnand %p1963_p3, %p1960_p2 }
  0x29   :  { %1968 = shalt.err (!%p1965_p4)
}
  0x2a   :  { %s1969_s20 = scalar_lea.vmem %s41_s11, 2048  ;;  %p1974_p6 = scmp.lt.s32.totalorder %s41_s11, %s41_s11 }
  0x2b   :  { %p1970_p5 = scmp.ne.s32.totalorder %s41_s11, %s1969_s20  ;;  %p1975_p7 = scmp.lt.s32.totalorder %s1969_s20, %s1969_s20 }
  0x2d   :  { %p1976_p8 = por %p1975_p7, %p1974_p6 }
  0x2f   :  { %p1977_p9 = pnand %p1976_p8, %p1970_p5 }
  0x31   :  { %1980 = shalt.err (!%p1977_p9)
}
  0x32   :  { %46 = dma.hbm_to_vmem [thread:$0]  %s2358_s2, 2048, %s41_s11, [#allocation6], %s2011_s24, %s2011_s24, %s2012_s25  }
  0x33   :  { %2003 = dma.done.wait [#allocation3], 256  }
  0x34   :  { %2004 = vsyncadd [#allocation3], 4294967040 }
  0x35   :  { %2005 = dma.done.wait [#allocation6], 2304  }
  0x36   :  { %2006 = vsyncadd [#allocation6], 4294964992  ;;  %vm60_vm0 = vcmask 130048   ;;  %v58_v0 = vld [vmem:[#allocation2] sm:$0xff]  ;;  %v59_v1 = vld [vmem:[#allocation2 + $0x8] sm:$0xff]  ;;  %s2014_s2 = smov [#allocation8]  }
  0x37   :  { %v56_v2 = vld [vmem:[#allocation5] sm:$0xff]  ;;  %v68_v3 = vand.u32 4294901760, %v58_v0  ;;  %v71_v4 = vand.u32 4294901760, %v59_v1  ;;  %v57_v5 = vld [vmem:[#allocation5 + $0x8] sm:$0xff]  ;;  %v2087_v27 = vld [vmem:[#allocation7] sm:$0xff]  ;;  %s1276_s21 = sshll.u32 %s2014_s2, 4  ;;  %s1277_s21 = int_to_ptr.vmem [resolvable:$true] %s1276_s21 }
  0x38   :  { %v62_v6 = vsel %vm60_vm0, %v56_v2, 0  ;;  %v65_v7 = vsel %vm60_vm0, %v57_v5, 0  ;;  %v2089_v28 = vld [vmem:[#allocation7 + $0x8] sm:$0xff]  ;;  %v586_v32 = vand.u32 4294901760, %v2087_v27  ;;  %v2099_v35 = vld [vmem:[#allocation7 + $0x10] sm:$0xff]  ;;  %v2101_v36 = vld [vmem:[#allocation7 + $0x18] sm:$0xff]  ;;  %p1986_p11 = scmp.lt.s32.totalorder %s1277_s21, %s1277_s21 }
  0x39   :  { %v134_v8 = vand.u32 4294901760, %v62_v6  ;;  %v1673_v9 = vpack.c.bf16 %v71_v4, %v68_v3  ;;  %v144_v10 = vand.u32 4294901760, %v65_v7  ;;  %v156_v11 = vsub.f32 %v58_v0, %v68_v3  ;;  %v2106_v39 = vld [vmem:[#allocation7 + $0x20] sm:$0xff]  ;;  %v2108_v40 = vld [vmem:[#allocation7 + $0x28] sm:$0xff]  ;;  %v2120_v44 = vld [vmem:[#allocation7 + $0x30] sm:$0xff]  ;;  %s1981_s22 = scalar_lea.vmem %s1277_s21, 256 }
  0x3a   :  { %v163_v12 = vsub.f32 %v59_v1, %v71_v4  ;;  %v589_v33 = vand.u32 4294901760, %v2089_v28  ;;  %v592_v37 = vand.u32 4294901760, %v2099_v35  ;;  %v595_v38 = vand.u32 4294901760, %v2101_v36  ;;  %v2122_v45 = vld [vmem:[#allocation7 + $0x38] sm:$0xff]  ;;  %v2135_v49 = vld [vmem:[#allocation7 + $0x40] sm:$0xff]  ;;  %v2137_v50 = vld [vmem:[#allocation7 + $0x48] sm:$0xff]  ;;  %p1982_p10 = scmp.ne.s32.totalorder %s1277_s21, %s1981_s22  ;;  %p1987_p12 = scmp.lt.s32.totalorder %s1981_s22, %s1981_s22 }
  0x3b   :  { %v135_v13 = vsub.f32 %v62_v6, %v134_v8  ;;  %1686 = vmatprep.subr.bf16.mxu0 %v1673_v9  ;;  %1674 = vmatprep.subr.bf16.mxu1 %v1673_v9  ;;  %v145_v14 = vsub.f32 %v65_v7, %v144_v10  ;;  %v157_v15 = vand.u32 4294901760, %v156_v11  ;;  %v598_v42 = vand.u32 4294901760, %v2106_v39  ;;  %v579_v55 = vld [vmem:[#allocation7 + $0x50] sm:$0xff]  ;;  %v580_v56 = vld [vmem:[#allocation7 + $0x58] sm:$0xff]  ;;  %v581_v60 = vld [vmem:[#allocation7 + $0x60] sm:$0xff] }
  0x3c   :  { %v164_v16 = vand.u32 4294901760, %v163_v12  ;;  %1688 = vmatpush3.bf16.msra.mxu0 %v1673_v9  ;;  %1676 = vmatpush3.bf16.msra.mxu1 %v1673_v9  ;;  %v1681_v31 = vpack.c.bf16 %v163_v12, %v156_v11  ;;  %v2097_v34 = vpack.c.bf16 %v589_v33, %v586_v32  ;;  %v2115_v41 = vpack.c.bf16 %v595_v38, %v592_v37  ;;  %v582_v61 = vld [vmem:[#allocation7 + $0x68] sm:$0xff]  ;;  %v583_v1 = vld [vmem:[#allocation7 + $0x70] sm:$0xff]  ;;  %v584_v2 = vld [vmem:[#allocation7 + $0x78] sm:$0xff]  ;;  %p1988_p13 = por %p1987_p12, %p1986_p11 }
  0x3d   :  { %v136_v17 = vand.u32 4294901760, %v135_v13  ;;  %v146_v18 = vand.u32 4294901760, %v145_v14  ;;  %v158_v19 = vsub.f32 %v156_v11, %v157_v15  ;;  %v601_v43 = vand.u32 4294901760, %v2108_v40 }
  0x3e   :  { %v165_v20 = vsub.f32 %v163_v12, %v164_v16  ;;  %v1689_v21 = vpack.c.bf16 %v164_v16, %v157_v15  ;;  %v604_v47 = vand.u32 4294901760, %v2120_v44  ;;  %v607_v48 = vand.u32 4294901760, %v2122_v45  ;;  %p1989_p0 = pnand %p1988_p13, %p1982_p10 }
  0x3f   :  { %1446 = vmatprep.mubr.f32.mxu0 %v136_v17  ;;  %v137_v22 = vsub.f32 %v135_v13, %v136_v17  ;;  %v147_v23 = vsub.f32 %v145_v14, %v146_v18  ;;  %v159_v24 = vand.u32 4294901760, %v158_v19  ;;  %v2129_v46 = vpack.c.bf16 %v601_v43, %v598_v42 }
  0x40   :  { %1447 = vmatmul.mubr.f32.vlgmr.msra.gmra.mrb[0].mxu0 %v146_v18  ;;  %v166_v25 = vand.u32 4294901760, %v165_v20  ;;  %1690 = vmatprep.subr.bf16.mxu0 %v1689_v21  ;;  %v2145_v51 = vpack.c.bf16 %v607_v48, %v604_v47  ;;  %v610_v52 = vand.u32 4294901760, %v2135_v49  ;;  %v613_v53 = vand.u32 4294901760, %v2137_v50 }
  0x41   :  { %v138_v26 = vand.u32 4294901760, %v137_v22  ;;  %1692 = vmatpush3.bf16.msra.mxu0 %v1689_v21  ;;  %1453 = vmatprep.mubr.f32.mxu0 %v134_v8  ;;  %v148_v29 = vand.u32 4294901760, %v147_v23  ;;  %v616_v57 = vand.u32 4294901760, %v579_v55  ;;  %v619_v58 = vand.u32 4294901760, %v580_v56 }
  0x42   :  { %v1677_v30 = vpack.c.bf16 %v166_v25, %v159_v24  ;;  %1694 = vmatprep.subr.bf16.mxu0 %v1673_v9  ;;  %v2157_v54 = vpack.c.bf16 %v613_v53, %v610_v52  ;;  %v622_v62 = vand.u32 4294901760, %v581_v60  ;;  %v625_v63 = vand.u32 4294901760, %v582_v61 }
  0x43   :  { %1425 = vmatprep.mubr.f32.mxu1 %v138_v26  ;;  %v2167_v59 = vpack.c.bf16 %v619_v58, %v616_v57  ;;  %v628_v3 = vand.u32 4294901760, %v583_v1  ;;  %v631_v4 = vand.u32 4294901760, %v584_v2  ;;  %v688_v6 = vsub.f32 %v2087_v27, %v586_v32 }
  0x44   :  { %1426 = vmatmul.mubr.f32.vlgmr.msra.gmra.mrb[0].mxu1 %v148_v29  ;;  %1678 = vmatprep.subr.bf16.mxu1 %v1677_v30  ;;  %v2173_v0 = vpack.c.bf16 %v625_v63, %v622_v62  ;;  %v695_v7 = vsub.f32 %v2089_v28, %v589_v33  ;;  %v758_v16 = vsub.f32 %v579_v55, %v616_v57 }
  0x45   :  { %1680 = vmatpush3.bf16.msra.mxu1 %v1677_v30  ;;  %1432 = vmatprep.mubr.f32.mxu1 %v134_v8  ;;  %v2179_v5 = vpack.c.bf16 %v631_v4, %v628_v3  ;;  %v765_v17 = vsub.f32 %v580_v56, %v619_v58  ;;  %v772_v23 = vsub.f32 %v581_v60, %v622_v62 }
  0x46   :  { %1682 = vmatprep.subr.bf16.mxu1 %v1681_v31  ;;  %v759_v18 = vand.u32 4294901760, %v758_v16  ;;  %v779_v24 = vsub.f32 %v582_v61, %v625_v63  ;;  %v793_v32 = vsub.f32 %v584_v2, %v631_v4  ;;  %v2220_v4 = vsub.f32 %v2099_v35, %v592_v37 }
  0x47   :  { %v766_v19 = vand.u32 4294901760, %v765_v17  ;;  %v773_v27 = vand.u32 4294901760, %v772_v23  ;;  %v2237_v35 = vsub.f32 %v2108_v40, %v601_v43  ;;  %v2250_v40 = vsub.f32 %v2120_v44, %v604_v47 }
  0x48   :  { %1454 = vmatmul.mubr.f32.vlgmr.msra.gmra.mrb[0].mxu0 %v144_v10  ;;  %v760_v21 = vsub.f32 %v758_v16, %v759_v18  ;;  %v780_v28 = vand.u32 4294901760, %v779_v24  ;;  %v794_v58 = vand.u32 4294901760, %v793_v32  ;;  %v2213_v2 = vpack.c.bf16 %v779_v24, %v772_v23 }
  0x49   :  { %1696 = vmatpush3.bf16.msra.mxu0 %v1673_v9  ;;  %1460 = vmatprep.mubr.f32.mxu0 %v134_v8  ;;  %v689_v8 = vand.u32 4294901760, %v688_v6  ;;  %v696_v9 = vand.u32 4294901760, %v695_v7  ;;  %v2197_v20 = vpack.c.bf16 %v766_v19, %v759_v18  ;;  %v767_v22 = vsub.f32 %v765_v17, %v766_v19 }
  0x4a   :  { %1698 = vmatprep.subr.bf16.mxu0 %v2097_v34  ;;  %v761_v25 = vand.u32 4294901760, %v760_v21  ;;  %v774_v30 = vsub.f32 %v772_v23, %v773_v27  ;;  %v2201_v33 = vpack.c.bf16 %v780_v28, %v773_v27  ;;  %v781_v55 = vsub.f32 %v779_v24, %v780_v28 }
  0x4b   :  { %v690_v11 = vsub.f32 %v688_v6, %v689_v8  ;;  %v697_v12 = vsub.f32 %v695_v7, %v696_v9  ;;  %v768_v26 = vand.u32 4294901760, %v767_v22  ;;  %v795_v61 = vsub.f32 %v793_v32, %v794_v58 }
  0x4c   :  { %1433 = vmatmul.mubr.f32.vlgmr.msra.gmra.mrb[0].mxu1 %v144_v10  ;;  %v775_v56 = vand.u32 4294901760, %v774_v30  ;;  %v2258_v43 = vsub.f32 %v2122_v45, %v607_v48  ;;  %v2273_v48 = vsub.f32 %v2135_v49, %v610_v52 }
  0x4d   :  { %1684 = vmatpush3.bf16.msra.mxu1 %v1681_v31  ;;  %1439 = vmatprep.mubr.f32.mxu1 %v135_v13  ;;  %v691_v13 = vand.u32 4294901760, %v690_v11  ;;  %v2199_v29 = vpack.c.bf16 %v768_v26, %v761_v25  ;;  %v786_v31 = vsub.f32 %v583_v1, %v628_v3  ;;  %v796_v11 = vand.u32 4294901760, %v795_v61 }
  0x4e   :  { %1794 = vmatprep.subr.bf16.mxu1 %v2097_v34  ;;  %v2211_v1 = vpack.c.bf16 %v765_v17, %v758_v16  ;;  %v2232_v17 = vsub.f32 %v2106_v39, %v598_v42  ;;  %v724_v39 = vand.u32 4294901760, %v2237_v35  ;;  %v738_v45 = vand.u32 4294901760, %v2258_v43 }
  0x4f   :  { %v787_v57 = vand.u32 4294901760, %v786_v31  ;;  %v2215_v3 = vpack.c.bf16 %v793_v32, %v786_v31 }
  0x50   :  { %1461 = vmatmul.mubr.f32.vlgmr.msra.gmra.mrb[0].mxu0 %v144_v10  ;;  %v2191_v10 = vpack.c.bf16 %v696_v9, %v689_v8  ;;  %v782_v8 = vand.u32 4294901760, %v781_v55  ;;  %v717_v25 = vand.u32 4294901760, %v2232_v17  ;;  %v725_v47 = vsub.f32 %v2237_v35, %v724_v39 }
  0x51   :  { %1700 = vmatpush3.bf16.msra.mxu0 %v2097_v34  ;;  %v2203_v9 = vpack.c.bf16 %v794_v58, %v787_v57  ;;  %v788_v60 = vsub.f32 %v786_v31, %v787_v57  ;;  %v731_v55 = vand.u32 4294901760, %v2250_v40  ;;  %v2278_v57 = vsub.f32 %v2137_v50, %v613_v53 }
  0x52   :  { %1702 = vmatprep.subr.bf16.mxu0 %v2115_v41  ;;  %v2205_v62 = vpack.c.bf16 %v782_v8, %v775_v56  ;;  %v718_v44 = vsub.f32 %v2232_v17, %v717_v25  ;;  %v745_v50 = vand.u32 4294901760, %v2273_v48 }
  0x53   :  { %v789_v63 = vand.u32 4294901760, %v788_v60  ;;  %v732_v49 = vsub.f32 %v2250_v40, %v731_v55  ;;  %v752_v53 = vand.u32 4294901760, %v2278_v57 }
  0x54   :  { %1440 = vmatmul.mubr.f32.vlgmr.msra.gmra.mrb[0].mxu1 %v145_v14  ;;  %v698_v14 = vand.u32 4294901760, %v697_v12  ;;  %v719_v61 = vand.u32 4294901760, %v718_v44 }
  0x55   :  { %1796 = vmatpush3.bf16.msra.mxu1 %v2097_v34  ;;  %1704 = vmatpush3.bf16.msra.mxu0 %v2115_v41  ;;  %v2207_v12 = vpack.c.bf16 %v796_v11, %v789_v63  ;;  %v726_v63 = vand.u32 4294901760, %v725_v47  ;;  %v739_v11 = vsub.f32 %v2258_v43, %v738_v45 }
  0x56   :  { %1798 = vmatprep.subr.bf16.mxu1 %v2115_v41  ;;  %1706 = vmatprep.subr.bf16.mxu0 %v2129_v46  ;;  %v2194_v15 = vpack.c.bf16 %v698_v14, %v691_v13  ;;  %v2209_v13 = vpack.c.bf16 %v695_v7, %v688_v6  ;;  %v2225_v14 = vsub.f32 %v2101_v36, %v595_v38  ;;  %v703_v6 = vand.u32 4294901760, %v2220_v4 }
  0x58   :  { %v710_v7 = vand.u32 4294901760, %v2225_v14  ;;  %v704_v22 = vsub.f32 %v2220_v4, %v703_v6 }
  0x59   :  { %1800 = vmatpush3.bf16.msra.mxu1 %v2115_v41  ;;  %1708 = vmatpush3.bf16.msra.mxu0 %v2129_v46 }
  0x5a   :  { %1802 = vmatprep.subr.bf16.mxu1 %v2129_v46  ;;  %1710 = vmatprep.subr.bf16.mxu0 %v2145_v51  ;;  %v711_v23 = vsub.f32 %v2225_v14, %v710_v7  ;;  %v1829_v28 = vpack.c.bf16 %v710_v7, %v703_v6  ;;  %v705_v30 = vand.u32 4294901760, %v704_v22  ;;  %v733_v6 = vand.u32 4294901760, %v732_v49 }
  0x5b   :  { %v740_v7 = vand.u32 4294901760, %v739_v11 }
  0x5c   :  { %v712_v31 = vand.u32 4294901760, %v711_v23 }
  0x5d   :  { %1804 = vmatpush3.bf16.msra.mxu1 %v2129_v46  ;;  %1712 = vmatpush3.bf16.msra.mxu0 %v2145_v51 }
  0x5e   :  { %1806 = vmatprep.subr.bf16.mxu1 %v2145_v51  ;;  %1714 = vmatprep.subr.bf16.mxu0 %v2157_v54  ;;  %v1733_v8 = vpack.c.bf16 %v712_v31, %v705_v30 }
  0x61   :  { %1808 = vmatpush3.bf16.msra.mxu1 %v2145_v51  ;;  %1716 = vmatpush3.bf16.msra.mxu0 %v2157_v54 }
  0x62   :  { %1810 = vmatprep.subr.bf16.mxu1 %v2157_v54  ;;  %1718 = vmatprep.subr.bf16.mxu0 %v2167_v59 }
  0x65   :  { %1812 = vmatpush3.bf16.msra.mxu1 %v2157_v54  ;;  %1720 = vmatpush3.bf16.msra.mxu0 %v2167_v59 }
  0x66   :  { %1814 = vmatprep.subr.bf16.mxu1 %v2167_v59  ;;  %1722 = vmatprep.subr.bf16.mxu0 %v2173_v0 }
  0x69   :  { %1816 = vmatpush3.bf16.msra.mxu1 %v2167_v59  ;;  %1724 = vmatpush3.bf16.msra.mxu0 %v2173_v0 }
  0x6a   :  { %1818 = vmatprep.subr.bf16.mxu1 %v2173_v0  ;;  %1726 = vmatprep.subr.bf16.mxu0 %v2179_v5 }
  0x6d   :  { %1820 = vmatpush3.bf16.msra.mxu1 %v2173_v0  ;;  %1728 = vmatpush3.bf16.msra.mxu0 %v2179_v5 }
  0x6e   :  { %1822 = vmatprep.subr.bf16.mxu1 %v2179_v5  ;;  %1730 = vmatprep.subr.bf16.mxu0 %v2194_v15 }
  0x71   :  { %1824 = vmatpush3.bf16.msra.mxu1 %v2179_v5 }
  0x72   :  { %1826 = vmatprep.subr.bf16.mxu1 %v2191_v10 }
 0x123   :  { %v1462_v18 = vpop.f32.mrb[0].mxu0 }
 0x124   :  { %v559_v19 = vpop.f32.mrb[1].mxu0 }
 0x127   :  { %v1441_v16 = vpop.f32.mrb[0].mxu1 }
 0x128   :  { %v1889_v37 = vadd.f32 %v1462_v18, %v1441_v16  ;;  %v313_v36 = vpop.f32.mrb[1].mxu1  ;;  %v1833_v18 = vpack.c.bf16 %v724_v39, %v717_v25  ;;  %v746_v16 = vsub.f32 %v2273_v48, %v745_v50 }
 0x129   :  { %v1890_v38 = vadd.f32 %v559_v19, %v313_v36  ;;  %v1837_v19 = vpack.c.bf16 %v738_v45, %v731_v55  ;;  %v1741_v36 = vpack.c.bf16 %v740_v7, %v733_v6 }
 0x12a   :  { %v2239_v21 = vand.u32 4294901760, %v1889_v37 }
 0x12b   :  { %v2243_v24 = vand.u32 4294901760, %v1890_v38 }
 0x12c   :  { %v2253_v42 = vsub.f32 %v1889_v37, %v2239_v21  ;;  %v753_v37 = vsub.f32 %v2278_v57, %v752_v53 }
 0x12d   :  { %v2261_v26 = vsub.f32 %v1890_v38, %v2243_v24  ;;  %v1841_v38 = vpack.c.bf16 %v752_v53, %v745_v50 }
 0x12e   :  { %v678_v27 = vand.u32 4294901760, %v2253_v42  ;;  %v754_v22 = vand.u32 4294901760, %v753_v37 }
 0x12f   :  { %v668_v32 = vand.u32 4294901760, %v2261_v26 }
 0x130   :  { %v679_v56 = vsub.f32 %v2253_v42, %v678_v27 }
 0x131   :  { %1600 = vmatprep.mubr.f32.mxu1 %v668_v32  ;;  %v669_v58 = vsub.f32 %v2261_v26, %v668_v32 }
 0x132   :  { %1601 = vmatmul.mubr.f32.vlgmr.msra.gmra.mrb[2].mxu1 %v678_v27  ;;  %v680_v52 = vand.u32 4294901760, %v679_v56 }
 0x133   :  { %1828 = vmatpush3.bf16.msra.mxu1 %v2191_v10  ;;  %1635 = vmatprep.mubr.f32.mxu1 %v2243_v24  ;;  %v670_v60 = vand.u32 4294901760, %v669_v58  ;;  %v1737_v10 = vpack.c.bf16 %v726_v63, %v719_v61 }
 0x134   :  { %1830 = vmatprep.subr.bf16.mxu1 %v1829_v28 }
 0x135   :  { %1495 = vmatprep.mubr.f32.mxu0 %v670_v60 }
 0x136   :  { %1496 = vmatmul.mubr.f32.vlgmr.msra.gmra.mrb[2].mxu0 %v680_v52 }
 0x137   :  { %1732 = vmatpush3.bf16.msra.mxu0 %v2194_v15  ;;  %1832 = vmatpush3.bf16.msra.mxu1 %v1829_v28  ;;  %v747_v15 = vand.u32 4294901760, %v746_v16 }
 0x138   :  { %1530 = vmatprep.mubr.f32.mxu0 %v2243_v24  ;;  %1734 = vmatprep.subr.bf16.mxu0 %v1733_v8 }
 0x139   :  { %1834 = vmatprep.subr.bf16.mxu1 %v1833_v18  ;;  %v1745_v23 = vpack.c.bf16 %v754_v22, %v747_v15 }
 0x13b   :  { %1736 = vmatpush3.bf16.msra.mxu0 %v1733_v8  ;;  %1836 = vmatpush3.bf16.msra.mxu1 %v1833_v18 }
 0x13c   :  { %1738 = vmatprep.subr.bf16.mxu0 %v1737_v10  ;;  %1838 = vmatprep.subr.bf16.mxu1 %v1837_v19 }
 0x13f   :  { %1740 = vmatpush3.bf16.msra.mxu0 %v1737_v10  ;;  %1840 = vmatpush3.bf16.msra.mxu1 %v1837_v19 }
 0x140   :  { %1742 = vmatprep.subr.bf16.mxu0 %v1741_v36  ;;  %1842 = vmatprep.subr.bf16.mxu1 %v1841_v38 }
 0x143   :  { %1744 = vmatpush3.bf16.msra.mxu0 %v1741_v36  ;;  %1844 = vmatpush3.bf16.msra.mxu1 %v1841_v38 }
 0x144   :  { %1746 = vmatprep.subr.bf16.mxu0 %v1745_v23  ;;  %1846 = vmatprep.subr.bf16.mxu1 %v2197_v20 }
 0x147   :  { %1748 = vmatpush3.bf16.msra.mxu0 %v1745_v23  ;;  %1848 = vmatpush3.bf16.msra.mxu1 %v2197_v20  ;;  %v1765_v20 = vpack.c.bf16 %v2225_v14, %v2220_v4 }
 0x148   :  { %1750 = vmatprep.subr.bf16.mxu0 %v2199_v29  ;;  %1850 = vmatprep.subr.bf16.mxu1 %v2201_v33 }
 0x14b   :  { %1752 = vmatpush3.bf16.msra.mxu0 %v2199_v29  ;;  %1852 = vmatpush3.bf16.msra.mxu1 %v2201_v33  ;;  %v1773_v29 = vpack.c.bf16 %v2258_v43, %v2250_v40 }
 0x14c   :  { %1754 = vmatprep.subr.bf16.mxu0 %v2205_v62  ;;  %1854 = vmatprep.subr.bf16.mxu1 %v2203_v9 }
 0x14f   :  { %1756 = vmatpush3.bf16.msra.mxu0 %v2205_v62  ;;  %1856 = vmatpush3.bf16.msra.mxu1 %v2203_v9 }
 0x150   :  { %1758 = vmatprep.subr.bf16.mxu0 %v2207_v12  ;;  %1858 = vmatprep.subr.bf16.mxu1 %v2097_v34 }
 0x152   :  { %1636 = vmatmul.mubr.f32.vlgmr.msra.gmra.mrb[2].mxu1 %v2239_v21 }
 0x153   :  { %1760 = vmatpush3.bf16.msra.mxu0 %v2207_v12  ;;  %1860 = vmatpush3.bf16.msra.mxu1 %v2097_v34  ;;  %v1769_v34 = vpack.c.bf16 %v2237_v35, %v2232_v17 }
 0x154   :  { %1670 = vmatprep.mubr.f32.mxu1 %v2243_v24  ;;  %1762 = vmatprep.subr.bf16.mxu0 %v2209_v13 }
 0x155   :  { %1862 = vmatprep.subr.bf16.mxu1 %v2115_v41 }
 0x156   :  { %1531 = vmatmul.mubr.f32.vlgmr.msra.gmra.mrb[2].mxu0 %v2239_v21 }
 0x157   :  { %1764 = vmatpush3.bf16.msra.mxu0 %v2209_v13  ;;  %1565 = vmatprep.mubr.f32.mxu0 %v2261_v26 }
 0x158   :  { %1864 = vmatpush3.bf16.msra.mxu1 %v2115_v41  ;;  %1766 = vmatprep.subr.bf16.mxu0 %v1765_v20  ;;  %v1777_v41 = vpack.c.bf16 %v2278_v57, %v2273_v48 }
 0x159   :  { %1866 = vmatprep.subr.bf16.mxu1 %v2129_v46 }
 0x15b   :  { %1768 = vmatpush3.bf16.msra.mxu0 %v1765_v20 }
 0x15c   :  { %1868 = vmatpush3.bf16.msra.mxu1 %v2129_v46  ;;  %1770 = vmatprep.subr.bf16.mxu0 %v1769_v34 }
 0x15d   :  { %1870 = vmatprep.subr.bf16.mxu1 %v2145_v51 }
 0x15f   :  { %1772 = vmatpush3.bf16.msra.mxu0 %v1769_v34 }
 0x160   :  { %1872 = vmatpush3.bf16.msra.mxu1 %v2145_v51  ;;  %1774 = vmatprep.subr.bf16.mxu0 %v1773_v29 }
 0x161   :  { %1874 = vmatprep.subr.bf16.mxu1 %v2157_v54 }
 0x163   :  { %1776 = vmatpush3.bf16.msra.mxu0 %v1773_v29 }
 0x164   :  { %1876 = vmatpush3.bf16.msra.mxu1 %v2157_v54  ;;  %1778 = vmatprep.subr.bf16.mxu0 %v1777_v41 }
 0x165   :  { %1878 = vmatprep.subr.bf16.mxu1 %v2167_v59 }
 0x167   :  { %1780 = vmatpush3.bf16.msra.mxu0 %v1777_v41 }
 0x168   :  { %1880 = vmatpush3.bf16.msra.mxu1 %v2167_v59  ;;  %1782 = vmatprep.subr.bf16.mxu0 %v2211_v1 }
 0x169   :  { %1882 = vmatprep.subr.bf16.mxu1 %v2173_v0 }
 0x16b   :  { %1784 = vmatpush3.bf16.msra.mxu0 %v2211_v1 }
 0x16c   :  { %1884 = vmatpush3.bf16.msra.mxu1 %v2173_v0  ;;  %1786 = vmatprep.subr.bf16.mxu0 %v2213_v2 }
 0x16d   :  { %1886 = vmatprep.subr.bf16.mxu1 %v2179_v5 }
 0x16f   :  { %1788 = vmatpush3.bf16.msra.mxu0 %v2213_v2 }
 0x170   :  { %1888 = vmatpush3.bf16.msra.mxu1 %v2179_v5  ;;  %1790 = vmatprep.subr.bf16.mxu0 %v2215_v3 }
 0x173   :  { %1671 = vmatmul.mubr.f32.vlgmr.msra.gmra.mrb[2].mxu1 %v2239_v21  ;;  %1792 = vmatpush3.bf16.msra.mxu0 %v2215_v3 }
 0x176   :  { %1566 = vmatmul.mubr.f32.vlgmr.msra.gmra.mrb[2].mxu0 %v2253_v42 }
 0x246   :  { %v1672_v46 = vpop.f32.mrb[2].mxu1 }
 0x247   :  { %v1259_v51 = vpop.f32.mrb[3].mxu1 }
 0x249   :  { %v1567_v54 = vpop.f32.mrb[2].mxu0 }
 0x24a   :  { %v1891_v59 = vadd.f32 %v1672_v46, %v1567_v54  ;;  %v943_v0 = vpop.f32.mrb[3].mxu0 }
 0x24b   :  { %v1892_v33 = vadd.f32 %v1259_v51, %v943_v0 }
 0x24c   :  { %1270 = vst [vmem:[#allocation8 + $0x8] sm:$0xff] %v1891_v59 }
 0x24d   :  { %1269 = vst [vmem:[#allocation8] sm:$0xff] %v1892_v33 }
 0x24e   :  { %1992 = shalt.err (!%p1989_p0)
}
 0x24f   :  { %s1993_s27 = scalar_lea.hbm %s2359_s3, 256 }
 0x250   :  { %p1994_p1 = scmp.ne.s32.totalorder %s2359_s3, %s1993_s27  ;;  %p1997_p2 = scmp.lt.u32.totalorder %s1993_s27, %s2359_s3 }
 0x252   :  { %p1999_p3 = pnand %p1997_p2, %p1994_p1 }
 0x254   :  { %2002 = shalt.err (!%p1999_p3)
}
 0x255   :  { %1282 = dma.vmem_to_hbm [thread:$0]  %s1277_s21, 256, %s2359_s3, [#allocation4], %s2011_s24, %s2011_s24, %s2012_s25  }
 0x256   :  { %2007 = dma.done.wait [#allocation4], 256  }
 0x257   :  { %2008 = vsyncadd [#allocation4], 4294967040 }
 0x258   :  { %1286 = vsyncpa [#allocation3], 1 }
 0x259   :  { %1287 = vsyncpa [#allocation6], 1 }
 0x25a   :  { %1288 = vsyncpa [#allocation4], 1 }

</bundles_post_ra>
